<compile_context>
chip_gen: v5e
topology: v5e:2x2
jax: 0.10.0
libtpu: 0.0.40
codegen_flags: <defaults>
</compile_context>

<pallas_src>
import functools

import jax
import jax.numpy as jnp
from jax import lax
from jax.experimental import pallas as pl
from jax.experimental.pallas import tpu as pltpu


def dense_conv_kernel(p_ref, w_ref, gb_ref, o_ref, *, num_w, eps=1e-5):
    """Conv(3x3x3) + InstanceNorm3d(affine) + ReLU for `block_n` samples in one matmul.

    p_ref:  (block_n, D*H, K)    row-panel patches; row = (d, h), col = (kd, kh, wp, cin)
    w_ref:  (K, W*G)             block-Toeplitz weight panel; col = (w, g)
    gb_ref: (2, W*G)             gamma / beta, each tiled across the W lane groups (f32)
    o_ref:  (block_n, D*H, W*G)  lane-dense conv+IN+ReLU output
    """
    block_n, dh, k = p_ref.shape
    wg = o_ref.shape[-1]
    g = wg // num_w                      # channels per lane group
    inv_n = 1.0 / float(dh * num_w)      # 1 / (D*H*W)

    # --- single MXU matmul for the whole block: (block_n*DH, K) @ (K, WG) -> f32 ---
    lhs = p_ref[...].reshape(block_n * dh, k)
    acc = jnp.dot(lhs, w_ref[...], preferred_element_type=jnp.float32)
    acc = acc.reshape(block_n, dh, wg)   # leading-dim split only: layout-free

    # --- per-(sample, channel) first / second moments (one elementwise pass) ---
    s1 = jnp.sum(acc, axis=1)            # (block_n, WG)  sublane reduce
    s2 = jnp.sum(acc * acc, axis=1)      # (block_n, WG)

    def group_total(v):
        # Every lane of a channel class ends up holding the total over the W lane groups
        # (circular lane rolls in steps of g).  Log-tree when num_w is a power of two.
        if num_w & (num_w - 1) == 0:
            shift = g
            while shift < num_w * g:
                v = v + pltpu.roll(v, shift=shift, axis=1)
                shift *= 2
            return v
        out = v
        for j in range(1, num_w):
            out = out + pltpu.roll(v, shift=j * g, axis=1)
        return out

    gb = gb_ref[...]
    gamma = gb[0:1, :]                   # (1, WG)
    beta = gb[1:2, :]                    # (1, WG)

    # InstanceNorm3d (biased variance) folded with the affine transform:
    #   y = acc * scale + shift,  scale = gamma * rsqrt(var + eps),  shift = beta - mean*scale
    # Variance via E[x^2] - mean^2 — keep the accumulator in f32 (cancellation in bf16).
    mean = group_total(s1) * inv_n                        # (block_n, WG)
    var = group_total(s2) * inv_n - mean * mean
    scale = gamma * lax.rsqrt(var + eps)                  # (block_n, WG)
    shift = beta - mean * scale
    y = acc * scale[:, None, :] + shift[:, None, :]
    o_ref[...] = jnp.maximum(y, 0.0).astype(o_ref.dtype)


def dense_convolve_ndhwc(x_ndhwc, w_dhwio, bias, gamma, beta, *, stride=(1, 1, 1),
                         block_n=1, compute_dtype=jnp.bfloat16):
    """Channels-last DenseConvolve forward: returns cat([conv_branch, x], axis=-1)."""
    assert tuple(stride) == (1, 1, 1), (
        "TODO(synk): only stride=(1,1,1) is implemented")
    N, D, H, W, Cin = x_ndhwc.shape
    G = w_dhwio.shape[-1]
    assert w_dhwio.shape == (3, 3, 3, Cin, G)
    assert N % block_n == 0

    DH, WG, Wp = D * H, W * G, W + 2
    K = 9 * Wp * Cin
    # Lane-dense output-tile assumption (unmasked vector stores).
    assert WG % 128 == 0, "W * growth_rate must be a multiple of 128 for this layout"

    # The Conv3d bias is mathematically cancelled by the InstanceNorm mean subtraction
    # (variance is shift-invariant), so it is intentionally unused.  Only valid with IN.
    del bias

    # ---------------- layout plumbing (XLA glue, no kernel compute) ----------------
    # Big operand streams in bf16; the kernel accumulates in f32 on the MXU.
    xc = x_ndhwc.astype(compute_dtype)
    xp = jnp.pad(xc, ((0, 0), (1, 1), (1, 1), (1, 1), (0, 0)))           # padding=1
    # Row-panel im2col: one row per (d, h); cols = (kd, kh, padded W row, Cin).
    # TODO(synk): at realistic volumes form these taps in-kernel from a resident D-tile
    #             instead of materializing a 9x-expanded patch stream in HBM.
    taps = [xp[:, kd:kd + D, kh:kh + H, :, :].reshape(N, D, H, Wp * Cin)
            for kd in range(3) for kh in range(3)]
    patches = jnp.concatenate(taps, axis=-1).reshape(N, DH, K)           # (N, DH, K)

    # Block-Toeplitz weight panel (K, W*G): column (w, g) holds the 3x3x3 filter taps
    # aligned with the padded-W row, zeros elsewhere.
    w_r = w_dhwio.astype(compute_dtype).reshape(9, 3, Cin, G)
    wbig = jnp.zeros((9, Wp, Cin, W, G), compute_dtype)
    for w_out in range(W):
        for kw in range(3):
            wbig = wbig.at[:, w_out + kw, :, w_out, :].set(w_r[:, kw, :, :])
    wbig = wbig.reshape(K, WG)

    # gamma / beta tiled across the W lane groups -> one small (2, W*G) f32 operand.
    gb = jnp.stack([jnp.tile(gamma, W), jnp.tile(beta, W)]).astype(jnp.float32)

    kernel = functools.partial(dense_conv_kernel, num_w=W)
    conv = pl.pallas_call(
        kernel,
        out_shape=jax.ShapeDtypeStruct((N, DH, WG), x_ndhwc.dtype),
        grid_spec=pltpu.PrefetchScalarGridSpec(
            num_scalar_prefetch=0,
            grid=(N // block_n,),
            in_specs=[
                pl.BlockSpec((block_n, DH, K), lambda n: (n, 0, 0)),
                # Grid-invariant blocks (weight panel, gamma/beta): constant index maps.
                pl.BlockSpec((K, WG), lambda n: (0, 0)),
                pl.BlockSpec((2, WG), lambda n: (0, 0)),
            ],
            out_specs=pl.BlockSpec((block_n, DH, WG), lambda n: (n, 0, 0)),
        ),
        compiler_params=pltpu.CompilerParams(
            dimension_semantics=("parallel",)),
    )(patches, wbig, gb)

    conv_ndhwc = conv.reshape(N, D, H, W, G)
    return jnp.concatenate([conv_ndhwc, x_ndhwc], axis=-1)


def dense_convolve(x_ncdhw, w_dhwio, bias, gamma, beta, **kwargs):
    """PyTorch-parity entry point (NCDHW in / NCDHW out, concat on dim=1).

    Prefer `dense_convolve_ndhwc` in a channels-last pipeline: the transposes here are
    full XLA relayouts of both branches (extra HBM round trips).
    """
    x_ndhwc = jnp.transpose(x_ncdhw, (0, 2, 3, 4, 1))
    out_ndhwc = dense_convolve_ndhwc(x_ndhwc, w_dhwio, bias, gamma, beta, **kwargs)
    return jnp.transpose(out_ndhwc, (0, 4, 1, 2, 3))


if __name__ == "__main__":
    key = jax.random.PRNGKey(0)
    N, Cin, D, H, W = 4, 4, 8, 8, 8
    G = 16  # growth_rate default  ->  W*G = 128 (lane-dense output tile)

    k1, k2, k3 = jax.random.split(key, 3)
    x = jax.random.normal(k1, (N, Cin, D, H, W), jnp.float32)
    # Conv3d weight: PyTorch stores (G, Cin, 3, 3, 3); kept here as DHWIO.
    w = jax.random.normal(k2, (3, 3, 3, Cin, G), jnp.float32) * 0.1
    b = jax.random.normal(k3, (G,), jnp.float32) * 0.1
    gamma = jnp.ones((G,), jnp.float32)   # InstanceNorm3d(affine=True) init
    beta = jnp.zeros((G,), jnp.float32)

    # block_n=2 -> M = block_n*D*H = 128 matmul rows per step AND 2 parallel grid steps.
    out = jax.block_until_ready(dense_convolve(x, w, b, gamma, beta, block_n=2))
    assert out.shape == (N, G + Cin, D, H, W)

    # Pure-JAX reference with the same bf16 operand rounding (f32 accumulation),
    # including the conv bias that InstanceNorm cancels.
    x_ndhwc = jnp.transpose(x, (0, 2, 3, 4, 1))
    conv_ref = lax.conv_general_dilated(
        x_ndhwc.astype(jnp.bfloat16), w.astype(jnp.bfloat16),
        window_strides=(1, 1, 1), padding=((1, 1), (1, 1), (1, 1)),
        dimension_numbers=("NDHWC", "DHWIO", "NDHWC"),
        preferred_element_type=jnp.float32) + b
    mean = conv_ref.mean(axis=(1, 2, 3), keepdims=True)
    var = ((conv_ref - mean) ** 2).mean(axis=(1, 2, 3), keepdims=True)
    in_ref = (conv_ref - mean) * lax.rsqrt(var + 1e-5) * gamma + beta
    relu_ref = jnp.maximum(in_ref, 0.0)
    ref = jnp.concatenate(
        [jnp.transpose(relu_ref, (0, 4, 1, 2, 3)), x], axis=1)

    assert jnp.allclose(out, ref, atol=5e-3, rtol=5e-3), "mismatch vs reference"
    print("KERNEL_OK")
</pallas_src>

<mosaic_0001>
module attributes {stable_mosaic.version = 11 : i64} {
  func.func @dense_conv_kernel(%arg0: i32, %arg1: memref<2x64x360xbf16, #tpu.memory_space<vmem>>, %arg2: memref<360x128xbf16, #tpu.memory_space<vmem>>, %arg3: memref<2x128xf32, #tpu.memory_space<vmem>>, %arg4: memref<2x64x128xf32, #tpu.memory_space<vmem>>) attributes {dimension_semantics = [#tpu.dimension_semantics<parallel>], iteration_bounds = array<i64: 2>, scalar_prefetch = 0 : i64, scratch_operands = 0 : i64, tpu.core_type = #tpu.core_type<tc>, window_params = [{transform_indices = @transform_0, window_bounds = array<i64: 2, 64, 360>}, {pipeline_mode = #tpu.pipeline_mode<synchronous>, transform_indices = @transform_1, window_bounds = array<i64: 360, 128>}, {pipeline_mode = #tpu.pipeline_mode<synchronous>, transform_indices = @transform_2, window_bounds = array<i64: 2, 128>}, {transform_indices = @transform_3, window_bounds = array<i64: 2, 64, 128>}]} {
    %c0 = arith.constant 0 : index
    %c0_0 = arith.constant 0 : index
    %c0_1 = arith.constant 0 : index
    %0 = vector.load %arg1[%c0, %c0_0, %c0_1] : memref<2x64x360xbf16, #tpu.memory_space<vmem>>, vector<2x64x360xbf16>
    %1 = vector.shape_cast %0 : vector<2x64x360xbf16> to vector<128x360xbf16>
    %c0_2 = arith.constant 0 : index
    %c0_3 = arith.constant 0 : index
    %2 = vector.load %arg2[%c0_2, %c0_3] : memref<360x128xbf16, #tpu.memory_space<vmem>>, vector<360x128xbf16>
    %cst = arith.constant dense<0.000000e+00> : vector<128x128xf32>
    %3 = tpu.matmul %1, %2, %cst {dimension_numbers = #tpu.dot_dimension_numbers<[1], [0], [0], [1], [0, 0, 1, 1], [], []>} : vector<128x360xbf16>, vector<360x128xbf16>, vector<128x128xf32> -> vector<128x128xf32>
    %4 = vector.shape_cast %3 : vector<128x128xf32> to vector<2x64x128xf32>
    %cst_4 = arith.constant dense<0.000000e+00> : vector<2x128xf32>
    %5 = vector.multi_reduction <add>, %4, %cst_4 [1] : vector<2x64x128xf32> to vector<2x128xf32>
    %6 = arith.mulf %4, %4 : vector<2x64x128xf32>
    %cst_5 = arith.constant dense<0.000000e+00> : vector<2x128xf32>
    %7 = vector.multi_reduction <add>, %6, %cst_5 [1] : vector<2x64x128xf32> to vector<2x128xf32>
    %c0_6 = arith.constant 0 : index
    %c0_7 = arith.constant 0 : index
    %8 = vector.load %arg3[%c0_6, %c0_7] : memref<2x128xf32, #tpu.memory_space<vmem>>, vector<2x128xf32>
    %9 = vector.extract_strided_slice %8 {offsets = [0, 0], sizes = [1, 128], strides = [1, 1]} : vector<2x128xf32> to vector<1x128xf32>
    %10 = vector.extract_strided_slice %8 {offsets = [1, 0], sizes = [1, 128], strides = [1, 1]} : vector<2x128xf32> to vector<1x128xf32>
    %c16_i32 = arith.constant 16 : i32
    %11 = tpu.dynamic_rotate %5 by %c16_i32 dim 1 : vector<2x128xf32>, i32 -> vector<2x128xf32>
    %12 = arith.addf %5, %11 : vector<2x128xf32>
    %c32_i32 = arith.constant 32 : i32
    %13 = tpu.dynamic_rotate %12 by %c32_i32 dim 1 : vector<2x128xf32>, i32 -> vector<2x128xf32>
    %14 = arith.addf %12, %13 : vector<2x128xf32>
    %c64_i32 = arith.constant 64 : i32
    %15 = tpu.dynamic_rotate %14 by %c64_i32 dim 1 : vector<2x128xf32>, i32 -> vector<2x128xf32>
    %16 = arith.addf %14, %15 : vector<2x128xf32>
    %cst_8 = arith.constant 0.001953125 : f32
    %17 = vector.broadcast %cst_8 : f32 to vector<2x128xf32>
    %18 = arith.mulf %16, %17 : vector<2x128xf32>
    %c16_i32_9 = arith.constant 16 : i32
    %19 = tpu.dynamic_rotate %7 by %c16_i32_9 dim 1 : vector<2x128xf32>, i32 -> vector<2x128xf32>
    %20 = arith.addf %7, %19 : vector<2x128xf32>
    %c32_i32_10 = arith.constant 32 : i32
    %21 = tpu.dynamic_rotate %20 by %c32_i32_10 dim 1 : vector<2x128xf32>, i32 -> vector<2x128xf32>
    %22 = arith.addf %20, %21 : vector<2x128xf32>
    %c64_i32_11 = arith.constant 64 : i32
    %23 = tpu.dynamic_rotate %22 by %c64_i32_11 dim 1 : vector<2x128xf32>, i32 -> vector<2x128xf32>
    %24 = arith.addf %22, %23 : vector<2x128xf32>
    %cst_12 = arith.constant 0.001953125 : f32
    %25 = vector.broadcast %cst_12 : f32 to vector<2x128xf32>
    %26 = arith.mulf %24, %25 : vector<2x128xf32>
    %27 = arith.mulf %18, %18 : vector<2x128xf32>
    %28 = arith.subf %26, %27 : vector<2x128xf32>
    %cst_13 = arith.constant 9.99999974E-6 : f32
    %29 = vector.broadcast %cst_13 : f32 to vector<2x128xf32>
    %30 = arith.addf %28, %29 : vector<2x128xf32>
    %31 = math.rsqrt %30 : vector<2x128xf32>
    %32 = vector.broadcast %9 : vector<1x128xf32> to vector<2x128xf32>
    %33 = arith.mulf %32, %31 : vector<2x128xf32>
    %34 = arith.mulf %18, %33 : vector<2x128xf32>
    %35 = vector.broadcast %10 : vector<1x128xf32> to vector<2x128xf32>
    %36 = arith.subf %35, %34 : vector<2x128xf32>
    %37 = vector.shape_cast %33 : vector<2x128xf32> to vector<2x1x128xf32>
    %38 = vector.broadcast %37 : vector<2x1x128xf32> to vector<2x64x128xf32>
    %39 = arith.mulf %4, %38 : vector<2x64x128xf32>
    %40 = vector.shape_cast %36 : vector<2x128xf32> to vector<2x1x128xf32>
    %41 = vector.broadcast %40 : vector<2x1x128xf32> to vector<2x64x128xf32>
    %42 = arith.addf %39, %41 : vector<2x64x128xf32>
    %cst_14 = arith.constant 0.000000e+00 : f32
    %43 = vector.broadcast %cst_14 : f32 to vector<2x64x128xf32>
    %44 = arith.maximumf %42, %43 : vector<2x64x128xf32>
    %c0_15 = arith.constant 0 : index
    %c0_16 = arith.constant 0 : index
    %c0_17 = arith.constant 0 : index
    %45 = vector.load %arg4[%c0_15, %c0_16, %c0_17] : memref<2x64x128xf32, #tpu.memory_space<vmem>>, vector<2x64x128xf32>
    tpu.vector_store %arg4[%c0_15, %c0_16, %c0_17], %44 {strides = array<i32>} : memref<2x64x128xf32, #tpu.memory_space<vmem>>, vector<2x64x128xf32>,
    return
  }
  func.func @transform_0(%arg0: i32) -> (i32, i32, i32) {
    %c0_i32 = arith.constant 0 : i32
    %c0_i32_0 = arith.constant 0 : i32
    %c0_i32_1 = arith.constant 0 : i32
    return %arg0, %c0_i32, %c0_i32_0 : i32, i32, i32
  }
  func.func @transform_1(%arg0: i32) -> (i32, i32) {
    %c0_i32 = arith.constant 0 : i32
    %c0_i32_0 = arith.constant 0 : i32
    %c0_i32_1 = arith.constant 0 : i32
    return %c0_i32, %c0_i32_0 : i32, i32
  }
  func.func @transform_2(%arg0: i32) -> (i32, i32) {
    %c0_i32 = arith.constant 0 : i32
    %c0_i32_0 = arith.constant 0 : i32
    %c0_i32_1 = arith.constant 0 : i32
    return %c0_i32, %c0_i32_0 : i32, i32
  }
  func.func @transform_3(%arg0: i32) -> (i32, i32, i32) {
    %c0_i32 = arith.constant 0 : i32
    %c0_i32_0 = arith.constant 0 : i32
    %c0_i32_1 = arith.constant 0 : i32
    return %arg0, %c0_i32, %c0_i32_0 : i32, i32, i32
  }
}

</mosaic_0001>

<bundles_post_ra>
// kernel: tpu_custom_call.1
= control target key start
LH: loop header
LB: loop body
LE: loop exit
PB: predicated region body
PF: predicated region fallthrough
CT: control target
= control target key end

     0   :  { %8 = vsyncpa [#allocation3], 0  ;;  %s2041_s0 = inlined_call_operand.hbm [shape: bf16[4,64,360], index: 0, kind: input, shape index: {}]   ;;  %s2042_s1 = inlined_call_operand.hbm [shape: bf16[360,128], index: 1, kind: input, shape index: {}]   ;;  %s2043_s2 = inlined_call_operand.hbm [shape: f32[2,128], index: 2, kind: input, shape index: {}]   ;;  %s2044_s3 = inlined_call_operand.hbm [shape: f32[4,64,128], index: 3, kind: output, shape index: {}]  }
   0x1   :  { %10 = vsyncpa [#allocation3 + $0x1], 0 }
   0x2   :  { %11 = vsyncpa [#allocation6], 0 }
   0x3   :  { %12 = vsyncpa [#allocation4], 0 }
   0x4   :  { %14 = vsyncpa [#allocation4 + $0x1], 0  ;;  %s1670_s12 = smov 0   ;;  %s1672_s13 = smov 0  }
   0x5   :  { %s1674_s14 = smov 0   ;;  %s1676_s15 = smov 0  }
   0x6 LB: > { %s1691_s16 = sadd.s32 4294967295, %s1637_s15   ;;  %s1113_s17 = sadd.s32 4294967294, %s1637_s15   ;;  %s1637_s15 = sphi %s1676_s15, %s2054_s15   ;;  %s1633_s14 = sphi %s1674_s14, %s2053_s14   ;;  %s1629_s13 = sphi %s1672_s13, %s2052_s13   ;;  %s1625_s12 = sphi %s1670_s12, %s2051_s12  }
   0x7   : > { %p40_p0 = scmp.ne.s32.totalorder %s1629_s13, %s1625_s12  ;;  %p41_p1 = scmp.eq.s32.totalorder %s1691_s16, 0 }
   0x8   : > { %p106_p2 = scmp.eq.s32.totalorder %s1691_s16, 1  ;;  %p112_p3 = scmp.eq.s32.totalorder %s1113_s17, 1 }
   0x9   : > { %p1700_p4 = por %p41_p1, %p40_p0  ;;  %p1114_p5 = scmp.ge.s32.totalorder %s1637_s15, 1 }
   0xa   : > { %p1705_p6 = por %p112_p3, %p40_p0  ;;  %p119_p7 = scmp.lt.s32.totalorder %s1637_s15, 3 }
   0xb   : > { %s130_s22 = sshll.u32 %s2042_s1, 4  ;;  %s1639_s24 = smov [#allocation5]   ;;  %s131_s22 = int_to_ptr.hbm [resolvable:$true] %s130_s22 }
   0xc   : > { %p1713_p8 = pnand %p1114_p5, %p119_p7  ;;  %s132_s25 = sshll.u32 %s1639_s24, 4  ;;  %s133_s25 = int_to_ptr.vmem [resolvable:$true] %s132_s25 }
   0xd   : > { %s145_s28 = sshll.u32 %s2043_s2, 4  ;;  %s1640_s29 = smov 64   ;;  %s146_s28 = int_to_ptr.hbm [resolvable:$true] %s145_s28 }
   0xe   : > { %p1409_p9 = pneg %p1713_p8  ;;  %s1641_s30 = smov 4  }
   0xf   : > { %s1642_s4 = smov [#allocation7]   ;;  %s1726_s6 = sadd.s32 1, %s1637_s15  }
  0x10   : > { %p1410_p10 = pnand %p1409_p9, %p41_p1  ;;  %s147_s5 = sshll.u32 %s1642_s4, 4  ;;  %s148_s5 = int_to_ptr.vmem [resolvable:$true] %s147_s5 }
  0x11   : > { %s27_s7 = sadd.s32 1, %s1633_s14  ;;  %s24_s8 = ssub.s32 %s1637_s15, %s1726_s6 }
  0x12   : > { %1412 = dma.hbm_to_vmem [thread:$0]  (!%p1410_p10), %s131_s22, 2880, %s133_s25, [#allocation6], %s1640_s29, %s1640_s29, %s1641_s30  }
  0x13   : > { %1415 = dma.hbm_to_vmem [thread:$0]  (!%p1410_p10), %s146_s28, 32, %s148_s5, [#allocation6]  }
  0x14   : > { %p34_p12 = scmp.ne.s32.totalorder %s1633_s14, %s1629_s13  ;;  %p25_p13 = scmp.eq.s32.totalorder %s24_s8, 0 }
  0x15   : > { %p35_p0 = scmp.eq.s32.totalorder %s1637_s15, 0  ;;  %p1426_p5 = scmp.lt.s32.totalorder %s1637_s15, 2 }
  0x16   : > { %p1736_p3 = por %p106_p2, %p34_p12  ;;  %s158_s11 = sand.u32 1, %s1633_s14  }
  0x17   : > { %s1742_s10 = scalar_select %p25_p13, %s1633_s14, %s27_s7  }
  0x18   : > { %p36_p7 = por %p35_p0, %p34_p12  ;;  %s1394_s17 = smul.u32 192, %s158_s11 }
  0x19   : > { %s1395_s20 = smul.u32 192, %s1637_s15  ;;  %s159_s29 = scalar_lea.sflag [#allocation3], %s158_s11 }
  0x1a   : > { %p1746_p9 = pnand %p1426_p5, %p36_p7  ;;  %s162_s26 = scalar_lea.vmem [#allocation2], %s1394_s17 }
  0x1b   : > { %s168_s25 = scalar_lea.hbm %s2041_s0, %s1395_s20  ;;  %s171_s27 = sshll.u32 %s162_s26, 4  ;;  %s172_s27 = int_to_ptr.vmem [resolvable:$true] %s171_s27 }
  0x1c   : > { %s169_s28 = sshll.u32 %s168_s25, 4  ;;  %p1541_p10 = pneg %p1746_p9  ;;  %s170_s28 = int_to_ptr.hbm [resolvable:$true] %s169_s28 }
  0x1d   : > { %s1537_s30 = sshra.s32 %s170_s28, 4  ;;  %s1544_s8 = scalar_lea.hbm %s2041_s0, 384  ;;  %s1538_s30 = int_to_ptr.hbm [resolvable:$true] %s1537_s30 }
  0x1e   : > { %s1539_s4 = scalar_lea.hbm %s1538_s30, 192  ;;  %p1545_p0 = scmp.lt.s32.totalorder %s1538_s30, %s2041_s0 }
  0x1f   : > { %p1540_p2 = scmp.ne.s32.totalorder %s1538_s30, %s1539_s4  ;;  %p1546_p5 = scmp.lt.s32.totalorder %s1544_s8, %s1539_s4 }
  0x21   : > { %p1542_p12 = pnand %p1541_p10, %p1540_p2  ;;  %p1547_p7 = por %p1546_p5, %p1545_p0 }
  0x23   : > { %p1543_p13 = pneg %p1542_p12 }
  0x25   : > { %p1548_p11 = pnand %p1547_p7, %p1543_p13 }
  0x27   : > { %1551 = shalt.err (!%p1548_p11)
}
  0x28   : > { %s1643_s11 = smov 192   ;;  %s1644_s17 = smov 12  }
  0x29   : > { %1419 = dma.hbm_to_vmem [thread:$0]  (!%p1746_p9), %s170_s28, 3072, %s172_s27, %s159_s29, %s1643_s11, %s1643_s11, %s1644_s17  }
  0x2a   : > { %183 = sbr.rel (%p1713_p8) target bundleno = 750 (0x2ee), region = 32  ;;  %s1766_s24 = sand.u32 (!%p1713_p8), 1, %s1629_s13  }
  0x2b   : > { %s1396_s25 = smul.u32 (!%p1713_p8), 192, %s1766_s24  ;;  %s186_s26 = scalar_lea.sflag (!%p1713_p8), [#allocation3], %s1766_s24 }
  0x2d   : > { %s1770_s30 = scalar_lea.vmem (!%p1713_p8), [#allocation2], %s1396_s25 }
  0x2f   : > { %1612 = dma.done.wait (%p1700_p4), %s186_s26, 3072  }
  0x30   : > { %1614 = vsyncadd (%p1700_p4), %s186_s26, 4294964224 }
  0x31   : > { %1616 = dma.done.wait (%p41_p1), [#allocation6], 2912  }
  0x32   : > { %1618 = vsyncadd (%p41_p1), [#allocation6], 4294964384  ;;  %v1354_v0 = vld [vmem:[#allocation5 + $0x38] sm:$0xff]  ;;  %v302_v2 = vld [vmem:[#allocation5 + $0xb0] sm:$0xf]  ;;  %vm583_vm0 = vcmask 1043456  }
  0x33   : > { %v1780_v1 = vld [vmem:[#allocation5 + $0x78] sm:$0xff]  ;;  %v512_v3 = vunpack.c.l.b16 %v302_v2  ;;  %1371 = vmatpush.bf16.msra.mxu3 %v1354_v0  ;;  %587 = vmatpush.bf16.msra.mxu0 %v1354_v0  ;;  %v1353_v4 = vld [vmem:[#allocation5 + $0x30] sm:$0xff]  ;;  %v1788_v8 = vld [vmem:[#allocation5 + $0xa8] sm:$0xff]  ;;  %vm558_vm1 = vcmask 850944   ;;  %vm805_vm2 = vcmask 1041409   ;;  %s1645_s18 = smov 16  }
  0x34   : > { %636 = vmatpush.bf16.msra.mxu1 %v1780_v1  ;;  %v1783_v6 = vld [vmem:[#allocation5 + $0x70] sm:$0xff]  ;;  %v1352_v9 = vld [vmem:[#allocation5 + $0x28] sm:$0xff]  ;;  %v1792_v11 = vld [vmem:[#allocation5 + $0xa0] sm:$0xff]  ;;  %s1646_s23 = smov 32   ;;  %s1647_s21 = smov 64  }
  0x35   : > { %v535_v5 = vpack.c.b16 %v512_v3, %v512_v3  ;;  %v1360_v10 = vld [vmem:[#allocation5 + $0x68] sm:$0xff]  ;;  %v1351_v12 = vld [vmem:[#allocation5 + $0x20] sm:$0xff]  ;;  %v1795_v14 = vld [vmem:[#allocation5 + $0x98] sm:$0xff]  ;;  %s1124_s27 = sshll.u32 %s1766_s24, 7  ;;  %s1370_s29 = sshll.u32 %s1691_s16, 7 }
  0x36   : > { %v1359_v13 = vld [vmem:[#allocation5 + $0x60] sm:$0xff]  ;;  %v1350_v15 = vld [vmem:[#allocation5 + $0x18] sm:$0xff]  ;;  %v1798_v17 = vld [vmem:[#allocation5 + $0x90] sm:$0xff]  ;;  %s1984_s28 = scalar_lea.vmem [#allocation8], %s1124_s27  ;;  %s1017_s5 = scalar_lea.hbm %s2044_s3, %s1370_s29 }
  0x37   : > { %v1785_v7 = vsel %vm583_vm0, %v535_v5, 0  ;;  %1372 = vmatpush.bf16.msra.mxu3 %v1353_v4  ;;  %588 = vmatpush.bf16.msra.mxu0 %v1353_v4  ;;  %v1358_v16 = vld [vmem:[#allocation5 + $0x58] sm:$0xff]  ;;  %v1349_v18 = vld [vmem:[#allocation5 + $0x10] sm:$0xff]  ;;  %v1801_v20 = vld [vmem:[#allocation5 + $0x88] sm:$0xff]  ;;  %s1018_s7 = sshll.u32 %s1984_s28, 4  ;;  %s1020_s8 = sshll.u32 %s1017_s5, 4  ;;  %s1019_s7 = int_to_ptr.vmem [resolvable:$true] %s1018_s7  ;;  %s1021_s8 = int_to_ptr.hbm [resolvable:$true] %s1020_s8 }
  0x38   : > { %686 = vmatpush.bf16.msra.mxu2 %v1785_v7  ;;  %637 = vmatpush.bf16.msra.mxu1 %v1783_v6  ;;  %v1357_v19 = vld [vmem:[#allocation5 + $0x50] sm:$0xff]  ;;  %v1348_v21 = vld [vmem:[#allocation5 + $0x8] sm:$0xff]  ;;  %v1803_v23 = vld [vmem:[#allocation5 + $0x80] sm:$0xff]  ;;  %s1005_s22 = scalar_lea.sflag [#allocation4], %s1766_s24  ;;  %s1581_s20 = sshra.s32 %s1021_s8, 4  ;;  %s1582_s20 = int_to_ptr.hbm [resolvable:$true] %s1581_s20 }
  0x39   : > { %v1356_v22 = vld [vmem:[#allocation5 + $0x48] sm:$0xff]  ;;  %v1347_v24 = vld [vmem:[#allocation5] sm:$0xff]  ;;  %v1325_v26 = vld [vmem:[%s1770_s30 + $0x10] sm:$0xf0]  ;;  %s1583_s11 = scalar_lea.hbm %s1582_s20, 128  ;;  %s1587_s26 = scalar_lea.hbm %s2044_s3, 256 }
  0x3a   : > { %v1135_v25 = vld [vmem:[%s1770_s30 + $0x8] sm:$0xf]  ;;  %v1199_v27 = vld [vmem:[%s1770_s30 + $0x90] sm:$0xf]  ;;  %v1342_v28 = vld [vmem:[%s1770_s30 + $0x98] sm:$0xf0]  ;;  %p1584_p1 = scmp.ne.s32.totalorder %s1582_s20, %s1583_s11  ;;  %p1588_p11 = scmp.lt.s32.totalorder %s1582_s20, %s2044_s3 }
  0x3b   : > { %1373 = vmatpush.bf16.msra.mxu3 %v1352_v9  ;;  %589 = vmatpush.bf16.msra.mxu0 %v1352_v9  ;;  %v1355_v29 = vld [vmem:[#allocation5 + $0x40] sm:$0xff]  ;;  %v1324_v31 = vld [vmem:[%s1770_s30 + $0x8] sm:$0xf0]  ;;  %v1129_v33 = vld [vmem:[%s1770_s30 + $0xc] sm:$0xf0]  ;;  %v1136_v34 = vor.u32 %v1325_v26, %v1135_v25  ;;  %v1200_v35 = vor.u32 %v1342_v28, %v1199_v27  ;;  %p1589_p9 = scmp.lt.s32.totalorder %s1587_s26, %s1583_s11 }
  0x3c   : > { %687 = vmatpush.bf16.msra.mxu2 %v1788_v8  ;;  %638 = vmatpush.bf16.msra.mxu1 %v1360_v10  ;;  %v1127_v30 = vld [vmem:[%s1770_s30] sm:$0xf]  ;;  %v1323_v32 = vld [vmem:[%s1770_s30 + $0x4] sm:$0xf]  ;;  %v1328_v39 = vld [vmem:[%s1770_s30 + $0x28] sm:$0xf0]  ;;  %p1585_p4 = pnand %p1584_p1, %p1736_p3 }
  0x3d   : > { %v1128_v36 = vor.u32 %v1324_v31, %v1127_v30  ;;  %v1132_v37 = vor.u32 %v1323_v32, %v1129_v33  ;;  %v1147_v38 = vld [vmem:[%s1770_s30 + $0x20] sm:$0xf]  ;;  %v1211_v40 = vld [vmem:[%s1770_s30 + $0xa8] sm:$0xf]  ;;  %v1345_v41 = vld [vmem:[%s1770_s30 + $0xb0] sm:$0xf0]  ;;  %p1590_p2 = por %p1589_p9, %p1588_p11 }
  0x3e   : > { %v1139_v42 = vld [vmem:[%s1770_s30 + $0x18] sm:$0xf]  ;;  %v1327_v43 = vld [vmem:[%s1770_s30 + $0x20] sm:$0xf0]  ;;  %v1326_v44 = vld [vmem:[%s1770_s30 + $0x1c] sm:$0xf]  ;;  %v1148_v46 = vor.u32 %v1328_v39, %v1147_v38  ;;  %v1212_v47 = vor.u32 %v1345_v41, %v1211_v40  ;;  %p1586_p8 = pneg %p1585_p4 }
  0x3f   : > { %1374 = vmatpush.bf16.msra.mxu3 %v1351_v12  ;;  %590 = vmatpush.bf16.msra.mxu0 %v1351_v12  ;;  %v1141_v45 = vld [vmem:[%s1770_s30 + $0x24] sm:$0xf0]  ;;  %v1140_v48 = vor.u32 %v1327_v43, %v1139_v42  ;;  %v1159_v50 = vld [vmem:[%s1770_s30 + $0x38] sm:$0xf]  ;;  %v1331_v51 = vld [vmem:[%s1770_s30 + $0x40] sm:$0xf0] }
  0x40   : > { %688 = vmatpush.bf16.msra.mxu2 %v1792_v11  ;;  %639 = vmatpush.bf16.msra.mxu1 %v1359_v13  ;;  %v1144_v49 = vor.u32 %v1326_v44, %v1141_v45  ;;  %v1341_v52 = vld [vmem:[%s1770_s30 + $0x94] sm:$0xf]  ;;  %v1201_v53 = vld [vmem:[%s1770_s30 + $0x9c] sm:$0xf0]  ;;  %v1151_v54 = vld [vmem:[%s1770_s30 + $0x30] sm:$0xf]  ;;  %v1160_v58 = vor.u32 %v1331_v51, %v1159_v50  ;;  %p1591_p10 = pnand %p1590_p2, %p1586_p8 }
  0x41   : > { %v1330_v55 = vld [vmem:[%s1770_s30 + $0x38] sm:$0xf0]  ;;  %v1329_v56 = vld [vmem:[%s1770_s30 + $0x34] sm:$0xf]  ;;  %v1153_v57 = vld [vmem:[%s1770_s30 + $0x3c] sm:$0xf0]  ;;  %v1204_v59 = vor.u32 %v1341_v52, %v1201_v53 }
  0x42   : > { %v1152_v60 = vor.u32 %v1330_v55, %v1151_v54  ;;  %v1156_v61 = vor.u32 %v1329_v56, %v1153_v57  ;;  %v1171_v62 = vld [vmem:[%s1770_s30 + $0x50] sm:$0xf]  ;;  %v1334_v63 = vld [vmem:[%s1770_s30 + $0x58] sm:$0xf0]  ;;  %v1344_v0 = vld [vmem:[%s1770_s30 + $0xac] sm:$0xf] }
  0x43   : > { %1375 = vmatpush.bf16.msra.mxu3 %v1350_v15  ;;  %591 = vmatpush.bf16.msra.mxu0 %v1350_v15  ;;  %v1163_v2 = vld [vmem:[%s1770_s30 + $0x48] sm:$0xf]  ;;  %v1333_v3 = vld [vmem:[%s1770_s30 + $0x50] sm:$0xf0]  ;;  %v1332_v4 = vld [vmem:[%s1770_s30 + $0x4c] sm:$0xf] }
  0x44   : > { %689 = vmatpush.bf16.msra.mxu2 %v1795_v14  ;;  %640 = vmatpush.bf16.msra.mxu1 %v1358_v16  ;;  %v1165_v5 = vld [vmem:[%s1770_s30 + $0x54] sm:$0xf0]  ;;  %v1219_v12 = vld [vmem:[%s1770_s30 + $0xb0] sm:$0xf]  ;;  %v1336_v15 = vld [vmem:[%s1770_s30 + $0x68] sm:$0xf0] }
  0x45   : > { %v1168_v9 = vor.u32 %v1332_v4, %v1165_v5  ;;  %v1339_v25 = vld [vmem:[%s1770_s30 + $0x80] sm:$0xf0]  ;;  %v1338_v26 = vld [vmem:[%s1770_s30 + $0x7c] sm:$0xf]  ;;  %v1189_v27 = vld [vmem:[%s1770_s30 + $0x84] sm:$0xf0] }
  0x46   : > { %v1192_v30 = vor.u32 %v1338_v26, %v1189_v27  ;;  %v1207_v31 = vld [vmem:[%s1770_s30 + $0x98] sm:$0xf]  ;;  %v1343_v32 = vld [vmem:[%s1770_s30 + $0xa0] sm:$0xf0] }
  0x47   : > { %1376 = vmatpush.bf16.msra.mxu3 %v1349_v18  ;;  %592 = vmatpush.bf16.msra.mxu0 %v1349_v18  ;;  %v1208_v33 = vor.u32 %v1343_v32, %v1207_v31 }
  0x48   : > { %690 = vmatpush.bf16.msra.mxu2 %v1798_v17  ;;  %641 = vmatpush.bf16.msra.mxu1 %v1357_v19 }
  0x4b   : > { %1377 = vmatpush.bf16.msra.mxu3 %v1348_v21  ;;  %593 = vmatpush.bf16.msra.mxu0 %v1348_v21 }
  0x4c   : > { %691 = vmatpush.bf16.msra.mxu2 %v1801_v20  ;;  %642 = vmatpush.bf16.msra.mxu1 %v1356_v22 }
  0x4f   : > { %1378 = vmatpush.bf16.msra.mxu3 %v1347_v24  ;;  %594 = vmatpush.bf16.msra.mxu0 %v1347_v24  ;;  %v1187_v24 = vld [vmem:[%s1770_s30 + $0x78] sm:$0xf] }
  0x50   : > { %692 = vmatpush.bf16.msra.mxu2 %v1803_v23  ;;  %643 = vmatpush.bf16.msra.mxu1 %v1355_v29 }
  0x52   : > { %625 = vmatmul.bf16.vlgmr.msra.gmra.mxu3 %v1200_v35  ;;  %595 = vmatmul.bf16.vlgmr.msra.gmra.mxu0 %v1128_v36 }
  0x53   : > { %1379 = vmatpush.bf16.msrb.mxu3 %v1780_v1  ;;  %1309 = vmatmul.msk.bf16.vlgmr.msra.gmra.mxu2 %vm558_vm1, %v1136_v34  ;;  %v1213_v1 = vld [vmem:[%s1770_s30 + $0xb4] sm:$0xf0] }
  0x54   : > { %644 = vmatmul.bf16.vlgmr.msra.gmra.mxu1 %v1132_v37 }
  0x57   : > { %1380 = vmatpush.bf16.msrb.mxu3 %v1783_v6  ;;  %v1172_v6 = vor.u32 %v1334_v63, %v1171_v62 }
  0x5b   : > { %1381 = vmatpush.bf16.msrb.mxu3 %v1360_v10  ;;  %v1183_v10 = vld [vmem:[%s1770_s30 + $0x68] sm:$0xf] }
  0x5f   : > { %1382 = vmatpush.bf16.msrb.mxu3 %v1359_v13  ;;  %v1346_v13 = vld [vmem:[%s1770_s30 + $0xb8] sm:$0xf0] }
  0x62   : > { %630 = vmatmul.bf16.gmra.mxu3 %v1212_v47  ;;  %600 = vmatmul.bf16.gmra.mxu0 %v1140_v48 }
  0x63   : > { %1383 = vmatpush.bf16.msrb.mxu3 %v1358_v16  ;;  %1310 = vmatmul.msk.bf16.gmra.mxu2 %vm558_vm1, %v1148_v46  ;;  %v1335_v16 = vld [vmem:[%s1770_s30 + $0x64] sm:$0xf] }
  0x64   : > { %649 = vmatmul.bf16.gmra.mxu1 %v1144_v49 }
  0x67   : > { %1384 = vmatpush.bf16.msrb.mxu3 %v1357_v19  ;;  %v1220_v19 = vor.u32 %v1346_v13, %v1219_v12 }
  0x6b   : > { %1385 = vmatpush.bf16.msrb.mxu3 %v1356_v22  ;;  %v1195_v22 = vld [vmem:[%s1770_s30 + $0x80] sm:$0xf] }
  0x6f   : > { %1386 = vmatpush.bf16.msrb.mxu3 %v1355_v29  ;;  %v1188_v29 = vor.u32 %v1339_v25, %v1187_v24 }
  0x72   : > { %674 = vmatmul.bf16.vlgmr.msrb.gmra.mxu3 %v1204_v59  ;;  %605 = vmatmul.bf16.gmra.mxu0 %v1152_v60 }
  0x73   : > { %1387 = vmatpush.bf16.msra.mxu3 %v1785_v7  ;;  %1311 = vmatmul.msk.bf16.gmra.mxu2 %vm558_vm1, %v1160_v58  ;;  %v1216_v7 = vor.u32 %v1344_v0, %v1213_v1 }
  0x74   : > { %654 = vmatmul.bf16.gmra.mxu1 %v1156_v61 }
  0x77   : > { %1388 = vmatpush.bf16.msra.mxu3 %v1788_v8  ;;  %v1164_v8 = vor.u32 %v1333_v3, %v1163_v2 }
  0x7b   : > { %1389 = vmatpush.bf16.msra.mxu3 %v1792_v11  ;;  %v1337_v11 = vld [vmem:[%s1770_s30 + $0x70] sm:$0xf0] }
  0x7c   : > { %v1184_v18 = vor.u32 %v1337_v11, %v1183_v10 }
  0x7f   : > { %1390 = vmatpush.bf16.msra.mxu3 %v1795_v14  ;;  %v1175_v14 = vld [vmem:[%s1770_s30 + $0x60] sm:$0xf] }
  0x80   : > { %v1176_v21 = vor.u32 %v1336_v15, %v1175_v14 }
  0x82   : > { %679 = vmatmul.bf16.gmra.mxu3 %v1216_v7  ;;  %610 = vmatmul.bf16.gmra.mxu0 %v1164_v8 }
  0x83   : > { %1391 = vmatpush.bf16.msra.mxu3 %v1798_v17  ;;  %1312 = vmatmul.msk.bf16.gmra.mxu2 %vm558_vm1, %v1172_v6  ;;  %v1177_v17 = vld [vmem:[%s1770_s30 + $0x6c] sm:$0xf0] }
  0x84   : > { %659 = vmatmul.bf16.gmra.mxu1 %v1168_v9 }
  0x87   : > { %1392 = vmatpush.bf16.msra.mxu3 %v1801_v20  ;;  %v1180_v20 = vor.u32 %v1335_v16, %v1177_v17 }
  0x8b   : > { %1393 = vmatpush.bf16.msra.mxu3 %v1803_v23  ;;  %v1340_v23 = vld [vmem:[%s1770_s30 + $0x88] sm:$0xf0] }
  0x8c   : > { %v1196_v28 = vor.u32 %v1340_v23, %v1195_v22 }
  0x92   : > { %1316 = vmatmul.msk.bf16.vlgmr.msra.gmra.mxu3 %vm558_vm1, %v1220_v19  ;;  %615 = vmatmul.bf16.gmra.mxu0 %v1176_v21 }
  0x93   : > { %1313 = vmatmul.msk.bf16.gmra.mxu2 %vm558_vm1, %v1184_v18 }
  0x94   : > { %664 = vmatmul.bf16.gmra.mxu1 %v1180_v20 }
  0xa2   : > { %620 = vmatmul.bf16.gmra.mxu0 %v1188_v29 }
  0xa3   : > { %1314 = vmatmul.msk.bf16.gmra.mxu2 %vm558_vm1, %v1196_v28 }
  0xa4   : > { %669 = vmatmul.bf16.gmra.mxu1 %v1192_v30 }
  0xb3   : > { %1315 = vmatmul.msk.bf16.gmra.mxu2 %vm558_vm1, %v1208_v33 }
  0xcf   : > { %v596_v34 = vpop.f32.mrf.mxu0 }
  0xd1   : > { %v645_v35 = vpop.f32.mrf.mxu1 }
  0xd2   : > { %v646_v36 = vadd.f32 %v645_v35, %v596_v34 }
  0xd5   : > { %v1876_v47 = vpop.f32.mrf.mxu3 }
  0xd6   : > { %v694_v37 = vpop.f32.mrf.mxu2 }
  0xd7   : > { %v1872_v38 = vadd.f32 %v694_v37, %v646_v36  ;;  %v598_v39 = vpop.f32.mrf.mxu0 }
  0xd9   : > { %v647_v40 = vpop.f32.mrf.mxu1  ;;  %v760_v35 = vmul.f32 %v1872_v38, %v1872_v38 }
  0xda   : > { %v648_v41 = vadd.f32 %v647_v40, %v598_v39 }
  0xdd   : > { %v1880_v53 = vpop.f32.mrf.mxu3 }
  0xde   : > { %v696_v42 = vpop.f32.mrf.mxu2 }
  0xdf   : > { %v1874_v43 = vadd.f32 %v696_v42, %v648_v41  ;;  %v601_v44 = vpop.f32.mrf.mxu0 }
  0xe1   : > { %v650_v45 = vpop.f32.mrf.mxu1  ;;  %v734_v21 = vadd.f32 %v1874_v43, %v1872_v38  ;;  %v761_v27 = vmul.f32 %v1874_v43, %v1874_v43 }
  0xe2   : > { %v651_v46 = vadd.f32 %v650_v45, %v601_v44 }
  0xe3   : > { %v776_v42 = vadd.f32 %v761_v27, %v760_v35 }
  0xe5   : > { %v1884_v59 = vpop.f32.mrf.mxu3 }
  0xe6   : > { %v699_v48 = vpop.f32.mrf.mxu2 }
  0xe7   : > { %v1878_v49 = vadd.f32 %v699_v48, %v651_v46  ;;  %v603_v50 = vpop.f32.mrf.mxu0 }
  0xe9   : > { %v652_v51 = vpop.f32.mrf.mxu1  ;;  %v735_v22 = vadd.f32 %v734_v21, %v1878_v49  ;;  %v762_v36 = vmul.f32 %v1878_v49, %v1878_v49 }
  0xea   : > { %v653_v52 = vadd.f32 %v652_v51, %v603_v50 }
  0xed   : > { %v1886_v1 = vpop.f32.mrf.mxu3 }
  0xee   : > { %v701_v54 = vpop.f32.mrf.mxu2 }
  0xef   : > { %v1882_v55 = vadd.f32 %v701_v54, %v653_v52  ;;  %v606_v56 = vpop.f32.mrf.mxu0  ;;  %v777_v52 = vadd.f32 %v776_v42, %v762_v36 }
  0xf1   : > { %v655_v57 = vpop.f32.mrf.mxu1  ;;  %v736_v28 = vadd.f32 %v735_v22, %v1882_v55  ;;  %v763_v44 = vmul.f32 %v1882_v55, %v1882_v55 }
  0xf2   : > { %v656_v18 = vadd.f32 %v655_v57, %v606_v56 }
  0xf5   : > { %v675_v5 = vpop.f32.mrf.mxu3 }
  0xf6   : > { %v704_v58 = vpop.f32.mrf.mxu2 }
  0xf7   : > { %v608_v60 = vpop.f32.mrf.mxu0  ;;  %v1891_v23 = vadd.f32 %v704_v58, %v656_v18  ;;  %v676_v58 = vadd.f32 %v675_v5, %v1876_v47 }
  0xf9   : > { %v657_v61 = vpop.f32.mrf.mxu1  ;;  %v737_v37 = vadd.f32 %v736_v28, %v1891_v23  ;;  %v764_v54 = vmul.f32 %v1891_v23, %v1891_v23 }
  0xfa   : > { %v658_v20 = vadd.f32 %v657_v61, %v608_v60 }
  0xfd   : > { %v677_v9 = vpop.f32.mrf.mxu3 }
  0xfe   : > { %v706_v62 = vpop.f32.mrf.mxu2 }
  0xff   : > { %v611_v63 = vpop.f32.mrf.mxu0  ;;  %v1896_v29 = vadd.f32 %v706_v62, %v658_v20  ;;  %v778_v62 = vadd.f32 %v777_v52, %v763_v44 }
 0x101   : > { %v660_v0 = vpop.f32.mrf.mxu1  ;;  %v738_v45 = vadd.f32 %v737_v37, %v1896_v29  ;;  %v779_v5 = vadd.f32 %v778_v62, %v764_v54 }
 0x102   : > { %v661_v24 = vadd.f32 %v660_v0, %v611_v63  ;;  %v765_v63 = vmul.f32 %v1896_v29, %v1896_v29 }
 0x105   : > { %v680_v14 = vpop.f32.mrf.mxu3 }
 0x106   : > { %v709_v2 = vpop.f32.mrf.mxu2 }
 0x107   : > { %v613_v3 = vpop.f32.mrf.mxu0  ;;  %v1903_v39 = vadd.f32 %v709_v2, %v661_v24 }
 0x109   : > { %v662_v4 = vpop.f32.mrf.mxu1  ;;  %v739_v56 = vadd.f32 %v738_v45, %v1903_v39 }
 0x10a   : > { %v663_v30 = vadd.f32 %v662_v4, %v613_v3 }
 0x10d   : > { %v682_v19 = vpop.f32.mrf.mxu3 }
 0x10e   : > { %v711_v6 = vpop.f32.mrf.mxu2  ;;  %v683_v22 = vadd.f32 %v682_v19, %v1886_v1 }
 0x10f   : > { %v616_v7 = vpop.f32.mrf.mxu0  ;;  %v1910_v46 = vadd.f32 %v711_v6, %v663_v30  ;;  %v766_v6 = vmul.f32 %v1903_v39, %v1903_v39 }
 0x111   : > { %v665_v8 = vpop.f32.mrf.mxu1  ;;  %v740_v0 = vadd.f32 %v739_v56, %v1910_v46 }
 0x112   : > { %v666_v33 = vadd.f32 %v665_v8, %v616_v7 }
 0x115   : > { %v729_v48 = vpop.f32.mrf.mxu3 }
 0x116   : > { %v714_v10 = vpop.f32.mrf.mxu2 }
 0x117   : > { %v618_v11 = vpop.f32.mrf.mxu0  ;;  %v1912_v50 = vadd.f32 %v714_v10, %v666_v33 }
 0x119   : > { %v667_v12 = vpop.f32.mrf.mxu1  ;;  %v768_v2 = vmul.f32 %v1912_v50, %v1912_v50 }
 0x11a   : > { %v668_v26 = vadd.f32 %v667_v12, %v618_v11  ;;  %v780_v11 = vadd.f32 %v779_v5, %v765_v63  ;;  %v678_v12 = vadd.f32 %v677_v9, %v1880_v53 }
 0x11c   : > { %v781_v20 = vadd.f32 %v780_v11, %v766_v6 }
 0x11d   : > { %v731_v24 = vpop.f32.mrf.mxu3 }
 0x11e   : > { %v716_v13 = vpop.f32.mrf.mxu2 }
 0x11f   : > { %v621_v15 = vpop.f32.mrf.mxu0  ;;  %v1905_v40 = vadd.f32 %v716_v13, %v668_v26  ;;  %v741_v13 = vrot.slane %v740_v0, 4 }
 0x121   : > { %v670_v16 = vpop.f32.mrf.mxu1  ;;  %v769_v60 = vmul.f32 %v1905_v40, %v1905_v40  ;;  %v747_v3 = vadd.f32 %v1905_v40, %v1912_v50  ;;  %v742_v28 = vadd.f32 %v741_v13, %v740_v0 }
 0x122   : > { %v671_v34 = vadd.f32 %v670_v16, %v621_v15  ;;  %v767_v15 = vmul.f32 %v1910_v46, %v1910_v46  ;;  %v681_v16 = vadd.f32 %v680_v14, %v1884_v59  ;;  %v1953_v14 = vadd.f32 %v731_v24, %v683_v22 }
 0x123   : > { %v789_v7 = vadd.f32 %v769_v60, %v768_v2 }
 0x124   : > { %v1948_v26 = vadd.f32 %v729_v48, %v681_v16  ;;  %v782_v59 = vadd.f32 %v781_v20, %v767_v15  ;;  %v775_v35 = vmul.f32 %v1953_v14, %v1953_v14 }
 0x126   : > { %v719_v17 = vpop.f32.mrf.mxu2  ;;  %v774_v1 = vmul.f32 %v1948_v26, %v1948_v26 }
 0x127   : > { %v623_v31 = vpop.f32.mrf.mxu0  ;;  %v1914_v51 = vadd.f32 %v719_v17, %v671_v34  ;;  %v783_v34 = vrot.slane %v782_v59, 4 }
 0x129   : > { %v672_v32 = vpop.f32.mrf.mxu1  ;;  %v770_v47 = vmul.f32 %v1914_v51, %v1914_v51  ;;  %v748_v8 = vadd.f32 %v747_v3, %v1914_v51  ;;  %v784_v45 = vadd.f32 %v783_v34, %v782_v59 }
 0x12a   : > { %v673_v41 = vadd.f32 %v672_v32, %v623_v31 }
 0x12b   : > { %v790_v17 = vadd.f32 %v789_v7, %v770_v47  ;;  %v785_v62 = vrot.slane %v784_v45, 2 }
 0x12d   : > { %v786_v5 = vadd.f32 %v785_v62, %v784_v45 }
 0x12e   : > { %v721_v25 = vpop.f32.mrf.mxu2 }
 0x12f   : > { %v1922_v61 = vadd.f32 %v721_v25, %v673_v41  ;;  %v743_v41 = vrot.slane %v742_v28, 2 }
 0x131   : > { %v771_v10 = vmul.f32 %v1922_v61, %v1922_v61  ;;  %v749_v18 = vadd.f32 %v748_v8, %v1922_v61  ;;  %v744_v48 = vadd.f32 %v743_v41, %v742_v28  ;;  %v787_v8 = vrot.slane %v786_v5, 1 }
 0x133   : > { %v791_v53 = vadd.f32 %v790_v17, %v771_v10  ;;  %v788_v11 = vadd.f32 %v787_v8, %v786_v5 }
 0x136   : > { %v724_v57 = vpop.f32.mrf.mxu2 }
 0x137   : > { %v1933_v4 = vadd.f32 %v724_v57, %v676_v58  ;;  %v745_v58 = vrot.slane %v744_v48, 1 }
 0x139   : > { %v772_v21 = vmul.f32 %v1933_v4, %v1933_v4  ;;  %v750_v9 = vadd.f32 %v749_v18, %v1933_v4  ;;  %v746_v3 = vadd.f32 %v745_v58, %v744_v48 }
 0x13b   : > { %v792_v30 = vadd.f32 %v791_v53, %v772_v21 }
 0x13e   : > { %v726_v25 = vpop.f32.mrf.mxu2 }
 0x13f   : > { %v1951_v27 = vadd.f32 %v726_v25, %v678_v12 }
 0x141   : > { %v751_v31 = vadd.f32 %v750_v9, %v1951_v27  ;;  %v773_v32 = vmul.f32 %v1951_v27, %v1951_v27 }
 0x143   : > { %v752_v19 = vadd.f32 %v751_v31, %v1948_v26  ;;  %v793_v33 = vadd.f32 %v792_v30, %v773_v32 }
 0x145   : > { %v753_v36 = vadd.f32 %v752_v19, %v1953_v14  ;;  %v794_v37 = vadd.f32 %v793_v33, %v774_v1 }
 0x147   : > { %v795_v42 = vadd.f32 %v794_v37, %v775_v35  ;;  %v754_v44 = vrot.slane %v753_v36, 4 }
 0x149   : > { %v755_v52 = vadd.f32 %v754_v44, %v753_v36  ;;  %v796_v54 = vrot.slane %v795_v42, 4 }
 0x14b   : > { %v756_v56 = vrot.slane %v755_v52, 2  ;;  %v797_v57 = vadd.f32 %v796_v54, %v795_v42 }
 0x14d   : > { %v757_v60 = vadd.f32 %v756_v56, %v755_v52  ;;  %v798_v63 = vrot.slane %v797_v57, 2 }
 0x14f   : > { %v758_v0 = vrot.slane %v757_v60, 1  ;;  %v799_v2 = vadd.f32 %v798_v63, %v797_v57 }
 0x151   : > { %v759_v47 = vadd.f32 %v758_v0, %v757_v60  ;;  %v800_v7 = vrot.slane %v799_v2, 1 }
 0x153   : > { %v806_v6 = vsel %vm805_vm2, %v759_v47, %v746_v3  ;;  %v801_v10 = vadd.f32 %v800_v7, %v799_v2 }
 0x154   : > { %808 = vrot.lane.b32.xlu0 %v806_v6, %s1645_s18 }
 0x155   : > { %v846_v12 = vsel %vm805_vm2, %v801_v10, %v788_v11 }
 0x15c   : > { %848 = vrot.lane.b32.xlu0 %v846_v12, %s1645_s18 }
 0x1c6   : > { %v809_v13 = vpop.permute.xlu0 %808 }
 0x1c7   : > { %v811_v15 = vrot.slane %v809_v13, 1  ;;  %v814_v17 = vadd.f32 %v809_v13, %v746_v3 }
 0x1c9   : > { %v815_v16 = vadd.f32 %v811_v15, %v759_v47 }
 0x1cb   : > { %v818_v18 = vrot.slane %v815_v16, 7 }
 0x1cd   : > { %v819_v21 = vsel %vm805_vm2, %v818_v18, %v814_v17  ;;  %v802_v18 = vld [vmem:[#allocation7] sm:$0x3] }
 0x1ce   : > { %821 = vrot.lane.b32.xlu1 %v819_v21, %s1646_s23  ;;  %v849_v20 = vpop.permute.xlu0 %848 }
 0x1cf   : > { %v851_v22 = vrot.slane %v849_v20, 1  ;;  %v854_v25 = vadd.f32 %v849_v20, %v788_v11 }
 0x1d1   : > { %v855_v24 = vadd.f32 %v851_v22, %v801_v10  ;;  %v910_v22 = vperm.slane %v802_v18, 0 }
 0x1d3   : > { %v858_v53 = vrot.slane %v855_v24, 7 }
 0x1d5   : > { %v859_v9 = vsel %vm805_vm2, %v858_v53, %v854_v25 }
 0x1d6   : > { %861 = vrot.lane.b32.xlu1 %v859_v9, %s1646_s23 }
 0x240   : > { %v822_v28 = vpop.permute.xlu1 %821 }
 0x241   : > { %v824_v59 = vrot.slane %v822_v28, 1  ;;  %v827_v31 = vadd.f32 %v822_v28, %v814_v17 }
 0x243   : > { %v828_v30 = vadd.f32 %v824_v59, %v815_v16 }
 0x245   : > { %v831_v32 = vrot.slane %v828_v30, 7 }
 0x247   : > { %v832_v1 = vsel %vm805_vm2, %v831_v32, %v827_v31 }
 0x248   : > { %834 = vrot.lane.b32.xlu2 %v832_v1, %s1647_s21  ;;  %v862_v19 = vpop.permute.xlu1 %861 }
 0x249   : > { %v864_v33 = vrot.slane %v862_v19, 1  ;;  %v867_v35 = vadd.f32 %v862_v19, %v854_v25 }
 0x24b   : > { %v868_v34 = vadd.f32 %v864_v33, %v855_v24 }
 0x24d   : > { %v871_v36 = vrot.slane %v868_v34, 7 }
 0x24f   : > { %v872_v37 = vsel %vm805_vm2, %v871_v36, %v867_v35 }
 0x250   : > { %874 = vrot.lane.b32.xlu2 %v872_v37, %s1647_s21 }
 0x2a2   : > { %v835_v41 = vpop.permute.xlu2 %834 }
 0x2a3   : > { %v837_v42 = vrot.slane %v835_v41, 1  ;;  %v840_v44 = vadd.f32 %v835_v41, %v827_v31  ;;  %v923_v31 = vperm.slane %v802_v18, 1 }
 0x2a5   : > { %v841_v45 = vadd.f32 %v837_v42, %v828_v30  ;;  %v842_v48 = vmul.f32 0.001953125, %v840_v44 }
 0x2a7   : > { %v843_v54 = vmul.f32 0.001953125, %v841_v45  ;;  %v884_v58 = vmul.f32 %v842_v48, %v842_v48 }
 0x2a9   : > { %v885_v63 = vmul.f32 %v843_v54, %v843_v54 }
 0x2aa   : > { %v875_v52 = vpop.permute.xlu2 %874 }
 0x2ab   : > { %v877_v56 = vrot.slane %v875_v52, 1  ;;  %v880_v57 = vadd.f32 %v875_v52, %v867_v35 }
 0x2ad   : > { %v881_v60 = vadd.f32 %v877_v56, %v868_v34  ;;  %v882_v62 = vmul.f32 0.001953125, %v880_v57 }
 0x2af   : > { %v883_v0 = vmul.f32 0.001953125, %v881_v60  ;;  %v886_v2 = vsub.f32 %v882_v62, %v884_v58 }
 0x2b1   : > { %v887_v3 = vsub.f32 %v883_v0, %v885_v63  ;;  %v888_v47 = vadd.f32 1e-05, %v886_v2 }
 0x2b3   : > { %v889_v5 = vadd.f32 1e-05, %v887_v3  ;;  %1473 = vrsqrt.f32 %v888_v47  ;;  %vm896_vm7 = vweird.f32 %v888_v47 }
 0x2b5   : > { %1475 = vrsqrt.f32 %v889_v5  ;;  %vm906_vm5 = vweird.f32 %v889_v5 }
 0x2b9   : > { %v1474_v6 = vpop.eup %1473 }
 0x2ba   : > { %v891_v7 = vmul.f32 %v1474_v6, %v888_v47  ;;  %vm897_vm4 = vweird.f32 %v1474_v6 }
 0x2bb   : > { %v1476_v8 = vpop.eup %1475  ;;  %vm898_vm8 = vmor %vm896_vm7, %vm897_vm4 }
 0x2bc   : > { %v892_v10 = vmul.f32 %v1474_v6, %v891_v7  ;;  %v901_v11 = vmul.f32 %v1476_v8, %v889_v5  ;;  %vm907_vm3 = vweird.f32 %v1476_v8 }
 0x2bd   : > { %vm908_vm6 = vmor %vm906_vm5, %vm907_vm3 }
 0x2be   : > { %v893_v12 = vmul.f32 0.5, %v892_v10  ;;  %v902_v13 = vmul.f32 %v1476_v8, %v901_v11 }
 0x2c0   : > { %v894_v15 = vsub.f32 1.5, %v893_v12  ;;  %v903_v16 = vmul.f32 0.5, %v902_v13 }
 0x2c2   : > { %v904_v17 = vsub.f32 1.5, %v903_v16  ;;  %v895_v21 = vmul.f32 %v1474_v6, %v894_v15 }
 0x2c4   : > { %v905_v20 = vmul.f32 %v1476_v8, %v904_v17  ;;  %v899_v53 = vsel %vm898_vm8, %v1474_v6, %v895_v21 }
 0x2c6   : > { %v909_v24 = vsel %vm908_vm6, %v1476_v8, %v905_v20 }
 0x2c7   : > { %v913_v25 = vrot.slane %v909_v24, 7 }
 0x2c9   : > { %v914_v9 = vsel %vm805_vm2, %v913_v25, %v899_v53 }
 0x2ca   : > { %v916_v28 = vmul.f32 %v914_v9, %v910_v22 }
 0x2cc   : > { %v918_v59 = vrot.slane %v916_v28, 1  ;;  %v921_v32 = vmul.f32 %v916_v28, %v842_v48  ;;  %v930_v19 = vperm.slane %v916_v28, 0 }
 0x2ce   : > { %v922_v30 = vmul.f32 %v918_v59, %v843_v54  ;;  %v934_v35 = vmul.f32 %v930_v19, %v1872_v38  ;;  %v935_v36 = vmul.f32 %v930_v19, %v1874_v43  ;;  %v936_v37 = vmul.f32 %v930_v19, %v1878_v49 }
 0x2cf   : > { %v931_v44 = vperm.slane %v918_v59, 0  ;;  %v937_v45 = vmul.f32 %v930_v19, %v1882_v55  ;;  %v938_v52 = vmul.f32 %v930_v19, %v1891_v23  ;;  %v939_v57 = vmul.f32 %v930_v19, %v1896_v29 }
 0x2d0   : > { %v926_v1 = vrot.slane %v922_v30, 7  ;;  %v940_v38 = vmul.f32 %v930_v19, %v1903_v39  ;;  %v941_v49 = vmul.f32 %v930_v19, %v1910_v46 }
 0x2d1   : > { %v942_v62 = vmul.f32 %v931_v44, %v1912_v50  ;;  %v943_v23 = vmul.f32 %v931_v44, %v1905_v40  ;;  %v944_v29 = vmul.f32 %v931_v44, %v1914_v51  ;;  %v945_v46 = vmul.f32 %v931_v44, %v1922_v61 }
 0x2d2   : > { %v927_v33 = vsel %vm805_vm2, %v926_v1, %v921_v32  ;;  %v946_v40 = vmul.f32 %v931_v44, %v1933_v4  ;;  %v947_v10 = vmul.f32 %v931_v44, %v1951_v27  ;;  %v948_v61 = vmul.f32 %v931_v44, %v1948_v26 }
 0x2d3   : > { %v929_v34 = vsub.f32 %v923_v31, %v927_v33  ;;  %v949_v4 = vmul.f32 %v931_v44, %v1953_v14 }
 0x2d5   : > { %v951_v41 = vrot.slane %v929_v34, 1  ;;  %v952_v42 = vperm.slane %v929_v34, 0 }
 0x2d7   : > { %v956_v48 = vadd.f32 %v952_v42, %v934_v35  ;;  %v957_v54 = vadd.f32 %v952_v42, %v935_v36  ;;  %v958_v56 = vadd.f32 %v952_v42, %v936_v37  ;;  %v959_v58 = vadd.f32 %v952_v42, %v937_v45 }
 0x2d8   : > { %v953_v60 = vperm.slane %v951_v41, 0  ;;  %v960_v43 = vadd.f32 %v952_v42, %v938_v52  ;;  %v961_v63 = vadd.f32 %v952_v42, %v939_v57  ;;  %v962_v0 = vadd.f32 %v952_v42, %v940_v38 }
 0x2d9   : > { %v972_v55 = vmax.f32 %v956_v48, 0.0  ;;  %v973_v2 = vmax.f32 %v957_v54, 0.0  ;;  %v974_v3 = vmax.f32 %v958_v56, 0.0  ;;  %v963_v47 = vadd.f32 %v952_v42, %v941_v49 }
 0x2da   : > { %v975_v5 = vmax.f32 %v959_v58, 0.0  ;;  %v964_v6 = vadd.f32 %v953_v60, %v942_v62  ;;  %v976_v39 = vmax.f32 %v960_v43, 0.0  ;;  %v965_v50 = vadd.f32 %v953_v60, %v943_v23 }
 0x2db   : > { %988 = vst [vmem:[%s1984_s28] sm:$0xff] %v972_v55  ;;  %v977_v7 = vmax.f32 %v961_v63, 0.0  ;;  %v966_v51 = vadd.f32 %v953_v60, %v944_v29  ;;  %v978_v8 = vmax.f32 %v962_v0, 0.0  ;;  %v967_v11 = vadd.f32 %v953_v60, %v945_v46 }
 0x2dc   : > { %989 = vst [vmem:[%s1984_s28 + $0x8] sm:$0xff] %v973_v2  ;;  %v979_v12 = vmax.f32 %v963_v47, 0.0  ;;  %v968_v13 = vadd.f32 %v953_v60, %v946_v40  ;;  %v980_v15 = vmax.f32 %v964_v6, 0.0  ;;  %v969_v16 = vadd.f32 %v953_v60, %v947_v10 }
 0x2dd   : > { %990 = vst [vmem:[%s1984_s28 + $0x10] sm:$0xff] %v974_v3  ;;  %v981_v17 = vmax.f32 %v965_v50, 0.0  ;;  %v970_v27 = vadd.f32 %v953_v60, %v948_v61  ;;  %v982_v18 = vmax.f32 %v966_v51, 0.0  ;;  %v971_v26 = vadd.f32 %v953_v60, %v949_v4 }
 0x2de   : > { %991 = vst [vmem:[%s1984_s28 + $0x18] sm:$0xff] %v975_v5  ;;  %v983_v21 = vmax.f32 %v967_v11, 0.0  ;;  %v984_v14 = vmax.f32 %v968_v13, 0.0  ;;  %v985_v20 = vmax.f32 %v969_v16, 0.0 }
 0x2df   : > { %992 = vst [vmem:[%s1984_s28 + $0x20] sm:$0xff] %v976_v39  ;;  %v986_v22 = vmax.f32 %v970_v27, 0.0  ;;  %v987_v24 = vmax.f32 %v971_v26, 0.0 }
 0x2e0   : > { %993 = vst [vmem:[%s1984_s28 + $0x28] sm:$0xff] %v977_v7 }
 0x2e1   : > { %994 = vst [vmem:[%s1984_s28 + $0x30] sm:$0xff] %v978_v8 }
 0x2e2   : > { %995 = vst [vmem:[%s1984_s28 + $0x38] sm:$0xff] %v979_v12 }
 0x2e3   : > { %996 = vst [vmem:[%s1984_s28 + $0x40] sm:$0xff] %v980_v15 }
 0x2e4   : > { %997 = vst [vmem:[%s1984_s28 + $0x48] sm:$0xff] %v981_v17 }
 0x2e5   : > { %998 = vst [vmem:[%s1984_s28 + $0x50] sm:$0xff] %v982_v18 }
 0x2e6   : > { %999 = vst [vmem:[%s1984_s28 + $0x58] sm:$0xff] %v983_v21 }
 0x2e7   : > { %1000 = vst [vmem:[%s1984_s28 + $0x60] sm:$0xff] %v984_v14 }
 0x2e8   : > { %1001 = vst [vmem:[%s1984_s28 + $0x68] sm:$0xff] %v985_v20 }
 0x2e9   : > { %1002 = vst [vmem:[%s1984_s28 + $0x70] sm:$0xff] %v986_v22 }
 0x2ea   : > { %1003 = vst [vmem:[%s1984_s28 + $0x78] sm:$0xff] %v987_v24 }
 0x2eb   : > { %1594 = shalt.err (!%p1591_p10)
}
 0x2ec   : > { %s1648_s24 = smov 128   ;;  %s1649_s23 = smov 8  }
 0x2ed   : > { %1407 = dma.vmem_to_hbm [thread:$0]  (%p1736_p3), %s1019_s7, 2048, %s1021_s8, %s1005_s22, %s1648_s24, %s1648_s24, %s1649_s23  }
 0x2ee PF: > { %s1035_s21 = sand.u32 1, %s1625_s12   ;;  %p2050_p12 = scmp.ge.s32.totalorder %s1637_s15, 2 }
 0x2ef   : > { %s1036_s27 = scalar_lea.sflag [#allocation4], %s1035_s21 }
 0x2f0   : > { %p1421_p13 = pnand %p2050_p12, %p1705_p6 }
 0x2f2   : > { %p1422_p0 = pneg %p1421_p13 }
 0x2f4   : > { %1620 = dma.done.wait (%p1422_p0), %s1036_s27, 2048  }
 0x2f5   : > { %1622 = vsyncadd (%p1422_p0), %s1036_s27, 4294965248  ;;  %p17_p5 = scmp.ge.s32.totalorder %s1726_s6, 4   ;;  %s2051_s12 = smov %s1629_s13 }
 0x2f6   : > { %s2052_s13 = smov %s1633_s14  ;;  %s2053_s14 = smov %s1742_s10 }
 0x2f7   : > { %s2054_s15 = smov %s1726_s6  ;;  %19 = sbr.rel (!%p17_p5) target bundleno = 6 (0x6), region = 85 }
 0x2fc   :  { %1042 = vsyncpa [#allocation3], 1 }
 0x2fd   :  { %1044 = vsyncpa [#allocation3 + $0x1], 1 }
 0x2fe   :  { %1045 = vsyncpa [#allocation6], 1 }
 0x2ff   :  { %1046 = vsyncpa [#allocation4], 1 }
 0x300   :  { %1048 = vsyncpa [#allocation4 + $0x1], 1 }

</bundles_post_ra>
